<compile_context>
chip_gen: v7x
topology: tpu7x:2x2x1
jax: 0.10.0
libtpu: 0.0.40
codegen_flags: <defaults>
</compile_context>

<pallas_src>
import functools

import numpy as np
import jax
import jax.numpy as jnp
from jax.experimental import pallas as pl
from jax.experimental.pallas import tpu as pltpu

_LANE = 128
_SUBLANE = 8


def _round_up(x: int, m: int) -> int:
    return ((x + m - 1) // m) * m


def _cdiv(a: int, b: int) -> int:
    return -(-a // b)


@functools.lru_cache(maxsize=8)
def _tpu_info():
    """(vmem_capacity_bytes, row_align, multi_core) with safe fallbacks."""
    vmem = 64 * 1024 * 1024  # conservative default (v7x per-TC VMEM)
    try:
        vmem = int(pltpu.get_tpu_info().vmem_capacity_bytes)
    except Exception:
        pass
    kind = ""
    try:
        kind = jax.devices()[0].device_kind.lower()
    except Exception:
        pass
    row_align = 128 if "v5" in kind else 256      # v5e MXU is 128-wide; v6e/v7x 256
    multi_core = ("v7" in kind) or ("7x" in kind)  # 2 TensorCores per chip on v7x
    return vmem, row_align, multi_core


@functools.lru_cache(maxsize=64)
def _pool_tables(l_in: int, l_out: int, l_in_pad: int):
    """Host-side (cached) pooling mask (l_in_pad, l_out) and reciprocal counts (1, l_out)."""
    idx = np.arange(l_out)
    starts = (idx * l_in) // l_out
    ends = ((idx + 1) * l_in + l_out - 1) // l_out           # ceil
    j = np.arange(l_in)[:, None]                             # (L_in, 1)
    mask = ((j >= starts[None, :]) & (j < ends[None, :])).astype(np.float32)
    if l_in_pad > l_in:                                      # zero rows: padded x columns
        mask = np.concatenate(
            [mask, np.zeros((l_in_pad - l_in, l_out), np.float32)], axis=0)
    inv = (1.0 / (ends - starts).astype(np.float32)).reshape(1, l_out)
    return mask, inv


def _pool_kernel_resident(x_ref, mask_ref, inv_ref, o_ref, *, precision):
    # x_ref: (TM, L_in) streamed; mask_ref: (L_in, L_out) resident; inv_ref: (1, L_out) f32.
    acc = jnp.dot(x_ref[...], mask_ref[...],
                  preferred_element_type=jnp.float32, precision=precision)
    o_ref[...] = (acc * inv_ref[...]).astype(o_ref.dtype)


def _pool_kernel_ktiled(x_ref, mask_ref, inv_ref, o_ref, acc_ref, *, precision):
    # Contraction (L_in) is tiled over the last grid axis; f32 accumulator scratch.
    k = pl.program_id(1)

    @pl.when(k == 0)
    def _():
        acc_ref[...] = jnp.zeros_like(acc_ref)

    acc_ref[...] += jnp.dot(x_ref[...], mask_ref[...],
                            preferred_element_type=jnp.float32, precision=precision)

    @pl.when(k == pl.num_programs(1) - 1)
    def _():
        o_ref[...] = (acc_ref[...] * inv_ref[...]).astype(o_ref.dtype)


def _finalize_tm(tm: int, rows_padded: int, row_align: int, multi_core: bool) -> int:
    tm = max(_SUBLANE, min(int(tm), rows_padded))
    if tm >= row_align:
        tm = (tm // row_align) * row_align
    else:
        tm = max(_SUBLANE, (tm // _SUBLANE) * _SUBLANE)
    tm = min(tm, rows_padded)
    # Keep at least 2 row tiles so v7x's two TensorCores both get work.
    if multi_core and rows_padded >= 2 * row_align and _cdiv(rows_padded, tm) < 2:
        tm = min(tm, _round_up(_cdiv(rows_padded, 2), row_align))
    return max(_SUBLANE, tm)


def adaptive_avg_pool1d(x: jnp.ndarray, output_size: int, *,
                        force_path=None, _debug_tk=None) -> jnp.ndarray:
    """x: (N, C, L_in) -> (N, C, output_size); same semantics as F.adaptive_avg_pool1d."""
    n, c, l_in = x.shape
    l_out = int(output_size)
    rows = n * c
    itemsize = jnp.dtype(x.dtype).itemsize

    vmem_cap, row_align, multi_core = _tpu_info()
    budget = int(vmem_cap * 0.70)                       # ~45 MiB v7x, ~90 MiB v5e/v6e
    vmem_limit = min(int(vmem_cap * 0.85), vmem_cap - (2 << 20))

    rows_padded = _round_up(rows, _SUBLANE)
    l_in_c = _round_up(l_in, _LANE)                     # lane-padded VMEM width of x blocks
    l_out_c = _round_up(l_out, _LANE)                   # lane-padded VMEM width of mask/out

    # ---- resident-mask sizing (mask single-buffered via pl.Buffered(1)) ----
    res_fixed = _round_up(l_in, _SUBLANE) * l_out_c * itemsize + _SUBLANE * l_out_c * 4
    res_per_row = 2 * itemsize * l_in_c + 2 * itemsize * l_out_c
    tm_res = (budget - res_fixed) // res_per_row if budget > res_fixed else 0

    use_resident = tm_res >= min(256, rows_padded)
    if force_path == "resident":
        use_resident = True
    elif force_path == "ktile":
        use_resident = False

    x2d = x.reshape(rows, l_in)
    # Default TPU matmul precision truncates f32 activations to bf16 in the MXU;
    # pin HIGHEST for f32 (mask is exact 0/1 in any dtype so bf16 inputs are fine as-is).
    precision = jax.lax.Precision.HIGHEST if x.dtype == jnp.float32 else None

    if use_resident:
        tm = _finalize_tm(tm_res, rows_padded, row_align, multi_core)
        mask_np, inv_np = _pool_tables(l_in, l_out, l_in)
        mask = jnp.asarray(mask_np, dtype=x.dtype)      # exact 0/1 -> lossless cast
        inv = jnp.asarray(inv_np)                       # f32
        grid = (_cdiv(rows, tm),)

        def _run(modern: bool):
            if modern:
                invariant = lambda shp, im: pl.BlockSpec(shp, im,
                                                         pipeline_mode=pl.Buffered(1))
                extra = dict(cost_estimate=pl.CostEstimate(
                    flops=2 * rows * l_in * l_out, transcendentals=0,
                    bytes_accessed=(rows * (l_in + l_out) + l_in * l_out) * itemsize))
            else:
                invariant = lambda shp, im: pl.BlockSpec(shp, im)
                extra = {}
            return pl.pallas_call(
                functools.partial(_pool_kernel_resident, precision=precision),
                out_shape=jax.ShapeDtypeStruct((rows, l_out), x.dtype),
                grid=grid,
                in_specs=[
                    pl.BlockSpec((tm, l_in), lambda i: (i, 0)),        # streamed rows
                    invariant((l_in, l_out), lambda i: (0, 0)),        # resident mask
                    invariant((1, l_out), lambda i: (0, 0)),           # resident 1/counts
                ],
                out_specs=pl.BlockSpec((tm, l_out), lambda i: (i, 0)),
                compiler_params=pltpu.CompilerParams(
                    dimension_semantics=("parallel",),
                    vmem_limit_bytes=vmem_limit),
                **extra,
            )(x2d, mask, inv)

        try:
            out2d = _run(True)
        except Exception:
            # Fallback for jax versions without BlockSpec.pipeline_mode / CostEstimate.
            out2d = _run(False)
        return out2d.reshape(n, c, l_out)

    # ---- K-tiled path: long L_in; mask streamed in (tk, L_out) bands ----
    if _debug_tk is not None:
        tk = int(_debug_tk)
    else:
        tk = (budget // 4) // max(1, 2 * l_out_c * itemsize)
        tk = max(_LANE, min(tk, _round_up(l_in, _LANE)))
        tk = (tk // _LANE) * _LANE
        if l_in % _LANE == 0:
            # Prefer a tk that divides l_in exactly: avoids padding x in HBM.
            t = tk
            while t > _LANE and l_in % t != 0:
                t -= _LANE
            if l_in % t == 0:
                tk = t
    l_in_pad = _round_up(l_in, tk)

    kt_fixed = 2 * tk * l_out_c * itemsize + _SUBLANE * l_out_c * 4
    kt_per_row = 2 * itemsize * tk + 2 * itemsize * l_out_c + 4 * l_out_c
    tm = (budget - kt_fixed) // kt_per_row if budget > kt_fixed else _SUBLANE
    tm = _finalize_tm(tm, rows_padded, row_align, multi_core)

    mask_np, inv_np = _pool_tables(l_in, l_out, l_in_pad)
    mask = jnp.asarray(mask_np, dtype=x.dtype)
    inv = jnp.asarray(inv_np)
    if l_in_pad != l_in:
        # TODO(synk): this zero-pad costs one extra HBM pass over x; it is skipped
        # whenever a lane-aligned tk divides l_in (the common long-sequence case).
        x2d = jnp.pad(x2d, ((0, 0), (0, l_in_pad - l_in)))

    grid = (_cdiv(rows, tm), l_in_pad // tk)

    def _run(modern: bool):
        if modern:
            invariant = lambda shp, im: pl.BlockSpec(shp, im,
                                                     pipeline_mode=pl.Buffered(1))
            extra = dict(cost_estimate=pl.CostEstimate(
                flops=2 * rows * l_in_pad * l_out, transcendentals=0,
                bytes_accessed=(rows * (l_in_pad + l_out) * itemsize
                                + grid[0] * l_in_pad * l_out * itemsize)))
        else:
            invariant = lambda shp, im: pl.BlockSpec(shp, im)
            extra = {}
        return pl.pallas_call(
            functools.partial(_pool_kernel_ktiled, precision=precision),
            out_shape=jax.ShapeDtypeStruct((rows, l_out), x.dtype),
            grid=grid,
            in_specs=[
                pl.BlockSpec((tm, tk), lambda i, k: (i, k)),        # streamed x tiles
                pl.BlockSpec((tk, l_out), lambda i, k: (k, 0)),     # streamed mask bands
                invariant((1, l_out), lambda i, k: (0, 0)),         # resident 1/counts
            ],
            out_specs=pl.BlockSpec((tm, l_out), lambda i, k: (i, 0)),
            scratch_shapes=[pltpu.VMEM((tm, l_out), jnp.float32)],
            compiler_params=pltpu.CompilerParams(
                dimension_semantics=("parallel", "arbitrary"),
                vmem_limit_bytes=vmem_limit),
            **extra,
        )(x2d, mask, inv)

    try:
        out2d = _run(True)
    except Exception:
        out2d = _run(False)
    return out2d.reshape(n, c, l_out)


class AdaptiveAvgPool1dLayer:
    """JAX/Pallas port of the PyTorch AdaptiveAvgPool1dLayer module (no params)."""

    def __init__(self, output_size: int):
        self.output_size = int(output_size)

    def __call__(self, x: jnp.ndarray) -> jnp.ndarray:
        return adaptive_avg_pool1d(x, self.output_size)


def _reference_adaptive_avg_pool1d(x, output_size):
    # Pure-JAX reference (loop over output positions) for correctness check.
    n, c, l_in = x.shape
    outs = []
    for i in range(output_size):
        s = (i * l_in) // output_size
        e = -(-((i + 1) * l_in) // output_size)  # ceil
        outs.append(jnp.mean(x[:, :, s:e], axis=-1))
    return jnp.stack(outs, axis=-1)


if __name__ == "__main__":
    key = jax.random.PRNGKey(0)
    N, C, L_in = 2, 4, 16
    output_size = 6  # non-divisible -> windows of mixed sizes (2 and 3)

    x = jax.random.normal(key, (N, C, L_in), dtype=jnp.float32)
    layer = AdaptiveAvgPool1dLayer(output_size)
    out = jax.block_until_ready(layer(x))
    ref = _reference_adaptive_avg_pool1d(x, output_size)
    assert out.shape == (N, C, output_size)
    assert jnp.allclose(out, ref, atol=1e-5, rtol=1e-5)

    # Also exercise the K-tiled (long-sequence) path with forced small tk.
    x2 = jax.random.normal(jax.random.PRNGKey(1), (2, 4, 512), dtype=jnp.float32)
    out2 = jax.block_until_ready(
        adaptive_avg_pool1d(x2, output_size, force_path="ktile", _debug_tk=128))
    ref2 = _reference_adaptive_avg_pool1d(x2, output_size)
    assert out2.shape == (2, 4, output_size)
    assert jnp.allclose(out2, ref2, atol=1e-4, rtol=1e-4)

    print("KERNEL_OK")
</pallas_src>

<mosaic_0001>
module attributes {stable_mosaic.version = 11 : i64} {
  func.func @_pool_kernel_resident(%arg0: i32, %arg1: memref<8x16xf32, #tpu.memory_space<vmem>>, %arg2: memref<16x6xf32, #tpu.memory_space<vmem>>, %arg3: memref<1x6xf32, #tpu.memory_space<vmem>>, %arg4: memref<8x6xf32, #tpu.memory_space<vmem>>) attributes {dimension_semantics = [#tpu.dimension_semantics<parallel>], iteration_bounds = array<i64: 1>, scalar_prefetch = 0 : i64, scratch_operands = 0 : i64, tpu.core_type = #tpu.core_type<tc>, window_params = [{transform_indices = @transform_0, window_bounds = array<i64: 8, 16>}, {pipeline_mode = #tpu.pipeline_mode<synchronous>, transform_indices = @transform_1, window_bounds = array<i64: 16, 6>}, {pipeline_mode = #tpu.pipeline_mode<synchronous>, transform_indices = @transform_2, window_bounds = array<i64: 1, 6>}, {transform_indices = @transform_3, window_bounds = array<i64: 8, 6>}]} {
    %c0 = arith.constant 0 : index
    %c0_0 = arith.constant 0 : index
    %0 = vector.load %arg1[%c0, %c0_0] : memref<8x16xf32, #tpu.memory_space<vmem>>, vector<8x16xf32>
    %c0_1 = arith.constant 0 : index
    %c0_2 = arith.constant 0 : index
    %1 = vector.load %arg2[%c0_1, %c0_2] : memref<16x6xf32, #tpu.memory_space<vmem>>, vector<16x6xf32>
    %cst = arith.constant dense<0.000000e+00> : vector<8x6xf32>
    %2 = tpu.matmul %0, %1, %cst {dimension_numbers = #tpu.dot_dimension_numbers<[1], [0], [0], [1], [0, 0, 1, 1], [], []>, precision = #tpu.contract_precision<fp32>} : vector<8x16xf32>, vector<16x6xf32>, vector<8x6xf32> -> vector<8x6xf32>
    %c0_3 = arith.constant 0 : index
    %c0_4 = arith.constant 0 : index
    %3 = vector.load %arg3[%c0_3, %c0_4] : memref<1x6xf32, #tpu.memory_space<vmem>>, vector<1x6xf32>
    %4 = vector.broadcast %3 : vector<1x6xf32> to vector<8x6xf32>
    %5 = arith.mulf %2, %4 : vector<8x6xf32>
    %c0_5 = arith.constant 0 : index
    %c0_6 = arith.constant 0 : index
    %6 = vector.load %arg4[%c0_5, %c0_6] : memref<8x6xf32, #tpu.memory_space<vmem>>, vector<8x6xf32>
    tpu.vector_store %arg4[%c0_5, %c0_6], %5 {strides = array<i32>} : memref<8x6xf32, #tpu.memory_space<vmem>>, vector<8x6xf32>,
    return
  }
  func.func @transform_0(%arg0: i32) -> (i32, i32) {
    %c0_i32 = arith.constant 0 : i32
    %c0_i32_0 = arith.constant 0 : i32
    return %arg0, %c0_i32 : i32, i32
  }
  func.func @transform_1(%arg0: i32) -> (i32, i32) {
    %c0_i32 = arith.constant 0 : i32
    %c0_i32_0 = arith.constant 0 : i32
    %c0_i32_1 = arith.constant 0 : i32
    return %c0_i32, %c0_i32_0 : i32, i32
  }
  func.func @transform_2(%arg0: i32) -> (i32, i32) {
    %c0_i32 = arith.constant 0 : i32
    %c0_i32_0 = arith.constant 0 : i32
    %c0_i32_1 = arith.constant 0 : i32
    return %c0_i32, %c0_i32_0 : i32, i32
  }
  func.func @transform_3(%arg0: i32) -> (i32, i32) {
    %c0_i32 = arith.constant 0 : i32
    %c0_i32_0 = arith.constant 0 : i32
    return %arg0, %c0_i32 : i32, i32
  }
}

module attributes {stable_mosaic.version = 11 : i64} {
  func.func @_pool_kernel_resident(%arg0: i32, %arg1: memref<8x16xf32, #tpu.memory_space<vmem>>, %arg2: memref<16x6xf32, #tpu.memory_space<vmem>>, %arg3: memref<1x6xf32, #tpu.memory_space<vmem>>, %arg4: memref<8x6xf32, #tpu.memory_space<vmem>>) attributes {dimension_semantics = [#tpu.dimension_semantics<parallel>], iteration_bounds = array<i64: 1>, scalar_prefetch = 0 : i64, scratch_operands = 0 : i64, tpu.core_type = #tpu.core_type<tc>, window_params = [{transform_indices = @transform_0, window_bounds = array<i64: 8, 16>}, {pipeline_mode = #tpu.pipeline_mode<synchronous>, transform_indices = @transform_1, window_bounds = array<i64: 16, 6>}, {pipeline_mode = #tpu.pipeline_mode<synchronous>, transform_indices = @transform_2, window_bounds = array<i64: 1, 6>}, {transform_indices = @transform_3, window_bounds = array<i64: 8, 6>}]} {
    %c0 = arith.constant 0 : index
    %c0_0 = arith.constant 0 : index
    %0 = vector.load %arg1[%c0, %c0_0] : memref<8x16xf32, #tpu.memory_space<vmem>>, vector<8x16xf32>
    %c0_1 = arith.constant 0 : index
    %c0_2 = arith.constant 0 : index
    %1 = vector.load %arg2[%c0_1, %c0_2] : memref<16x6xf32, #tpu.memory_space<vmem>>, vector<16x6xf32>
    %cst = arith.constant dense<0.000000e+00> : vector<8x6xf32>
    %2 = tpu.matmul %0, %1, %cst {dimension_numbers = #tpu.dot_dimension_numbers<[1], [0], [0], [1], [0, 0, 1, 1], [], []>, precision = #tpu.contract_precision<fp32>} : vector<8x16xf32>, vector<16x6xf32>, vector<8x6xf32> -> vector<8x6xf32>
    %c0_3 = arith.constant 0 : index
    %c0_4 = arith.constant 0 : index
    %3 = vector.load %arg3[%c0_3, %c0_4] : memref<1x6xf32, #tpu.memory_space<vmem>>, vector<1x6xf32>
    %4 = vector.broadcast %3 : vector<1x6xf32> to vector<8x6xf32>
    %5 = arith.mulf %2, %4 : vector<8x6xf32>
    %c0_5 = arith.constant 0 : index
    %c0_6 = arith.constant 0 : index
    %6 = vector.load %arg4[%c0_5, %c0_6] : memref<8x6xf32, #tpu.memory_space<vmem>>, vector<8x6xf32>
    tpu.vector_store %arg4[%c0_5, %c0_6], %5 {strides = array<i32>} : memref<8x6xf32, #tpu.memory_space<vmem>>, vector<8x6xf32>,
    return
  }
  func.func @transform_0(%arg0: i32) -> (i32, i32) {
    %c0_i32 = arith.constant 0 : i32
    %c0_i32_0 = arith.constant 0 : i32
    return %arg0, %c0_i32 : i32, i32
  }
  func.func @transform_1(%arg0: i32) -> (i32, i32) {
    %c0_i32 = arith.constant 0 : i32
    %c0_i32_0 = arith.constant 0 : i32
    %c0_i32_1 = arith.constant 0 : i32
    return %c0_i32, %c0_i32_0 : i32, i32
  }
  func.func @transform_2(%arg0: i32) -> (i32, i32) {
    %c0_i32 = arith.constant 0 : i32
    %c0_i32_0 = arith.constant 0 : i32
    %c0_i32_1 = arith.constant 0 : i32
    return %c0_i32, %c0_i32_0 : i32, i32
  }
  func.func @transform_3(%arg0: i32) -> (i32, i32) {
    %c0_i32 = arith.constant 0 : i32
    %c0_i32_0 = arith.constant 0 : i32
    return %arg0, %c0_i32 : i32, i32
  }
}

</mosaic_0001>

<bundles_post_ra>
// kernel: tpu_custom_call.1
= control target key start
LH: loop header
LB: loop body
LE: loop exit
PB: predicated region body
PF: predicated region fallthrough
CT: control target
= control target key end

     0   :  { %v621_v3 = vmov 0.0|0.0   ;;  %vm622_vm0 = vmmov 0   ;;  %v623_v6 = vmov 0.0   ;;  %vm18_vm1 = vcmask 130048   ;;  %s675_s0 = inlined_call_operand.vmem [shape: f32[8,16], index: 0, kind: input, shape index: {}]   ;;  %s676_s1 = inlined_call_operand.vmem [shape: f32[16,6], index: 1, kind: input, shape index: {}]   ;;  %s677_s2 = inlined_call_operand.vmem [shape: f32[1,6], index: 2, kind: input, shape index: {}]   ;;  %s678_s3 = inlined_call_operand.hbm [shape: f32[8,6], index: 3, kind: output, shape index: {}]  }
   0x1   :  { %v16_v0 = vld [vmem:[%s676_s1] sm:$0xff]  ;;  %v17_v1 = vld [vmem:[%s676_s1 + $0x8] sm:$0xff]  ;;  %575 = vmatprep.subr.bf16.mxu0 %v621_v3  ;;  %549 = vmatprep.mubr.msk.f32.mxu0 %vm622_vm0, %v623_v6 }
   0x2   :  { %v15_v2 = vld [vmem:[%s675_s0] sm:$0xff]  ;;  %v23_v4 = vand.u32 4294901760, %v16_v0  ;;  %v26_v5 = vand.u32 4294901760, %v17_v1 }
   0x3   :  { %8 = vsyncpa [#allocation3], 0  ;;  %566 = vmatprep.subr.bf16.mxu1 %v621_v3  ;;  %v20_v7 = vsel %vm18_vm1, %v15_v2, 0  ;;  %528 = vmatprep.mubr.msk.f32.mxu1 %vm622_vm0, %v623_v6  ;;  %v505_v28 = vld [vmem:[%s677_s2] ss:$0 sm:$0xff]  ;;  %s624_s18 = smov [#allocation2]  }
   0x4   :  { %v567_v8 = vpack.c.bf16 %v26_v5, %v23_v4  ;;  %v101_v9 = vsub.f32 %v16_v0, %v23_v4  ;;  %v108_v10 = vsub.f32 %v17_v1, %v26_v5  ;;  %v89_v11 = vand.u32 4294901760, %v20_v7  ;;  %s497_s19 = sshll.u32 %s624_s18, 4  ;;  %s498_s19 = int_to_ptr.vmem [resolvable:$true] %s497_s19 }
   0x5   :  { %vm489_vm2 = vcmask 48128   ;;  %s597_s20 = scalar_lea.vmem %s498_s19, 128  ;;  %p602_p1 = scmp.lt.s32.totalorder %s498_s19, %s498_s19 }
   0x6   :  { %577 = vmatpush3.bf16.msra.mxu0 %v567_v8  ;;  %v90_v12 = vsub.f32 %v20_v7, %v89_v11  ;;  %568 = vmatpush3.bf16.msra.mxu1 %v567_v8  ;;  %v102_v13 = vand.u32 4294901760, %v101_v9  ;;  %v109_v14 = vand.u32 4294901760, %v108_v10  ;;  %v573_v24 = vpack.c.bf16 %v108_v10, %v101_v9  ;;  %p598_p0 = scmp.ne.s32.totalorder %s498_s19, %s597_s20  ;;  %p603_p2 = scmp.lt.s32.totalorder %s597_s20, %s597_s20 }
   0x7   :  { %569 = vmatprep.subr.bf16.mxu1 %v621_v3  ;;  %578 = vmatprep.subr.bf16.mxu0 %v621_v3 }
   0x8   :  { %v91_v15 = vand.u32 4294901760, %v90_v12  ;;  %v103_v16 = vsub.f32 %v101_v9, %v102_v13  ;;  %v110_v17 = vsub.f32 %v108_v10, %v109_v14  ;;  %v579_v18 = vpack.c.bf16 %v109_v14, %v102_v13  ;;  %p604_p3 = por %p603_p2, %p602_p1 }
   0xa   :  { %550 = vmatmul.mubr.f32.vlgmr.msra.gmra.mrb[0].mxu0 %v91_v15  ;;  %v92_v19 = vsub.f32 %v90_v12, %v91_v15  ;;  %v104_v20 = vand.u32 4294901760, %v103_v16  ;;  %v111_v21 = vand.u32 4294901760, %v110_v17  ;;  %p605_p4 = pnand %p604_p3, %p598_p0 }
   0xb   :  { %580 = vmatpush3.bf16.msra.mxu0 %v579_v18  ;;  %556 = vmatprep.mubr.msk.f32.mxu0 %vm622_vm0, %v623_v6 }
   0xc   :  { %v93_v22 = vand.u32 4294901760, %v92_v19  ;;  %v570_v23 = vpack.c.bf16 %v111_v21, %v104_v20  ;;  %581 = vmatprep.subr.bf16.mxu0 %v621_v3 }
   0xe   :  { %529 = vmatmul.mubr.f32.vlgmr.msra.gmra.mrb[0].mxu1 %v93_v22 }
   0xf   :  { %571 = vmatpush3.bf16.msra.mxu1 %v570_v23  ;;  %535 = vmatprep.mubr.msk.f32.mxu1 %vm622_vm0, %v623_v6 }
  0x10   :  { %572 = vmatprep.subr.bf16.mxu1 %v621_v3 }
  0x12   :  { %557 = vmatmul.mubr.f32.vlgmr.msra.gmra.mrb[0].mxu0 %v89_v11 }
  0x13   :  { %583 = vmatpush3.bf16.msra.mxu0 %v567_v8  ;;  %563 = vmatprep.mubr.msk.f32.mxu0 %vm622_vm0, %v623_v6 }
  0x16   :  { %536 = vmatmul.mubr.f32.vlgmr.msra.gmra.mrb[0].mxu1 %v89_v11 }
  0x17   :  { %574 = vmatpush3.bf16.msra.mxu1 %v573_v24  ;;  %542 = vmatprep.mubr.msk.f32.mxu1 %vm622_vm0, %v623_v6 }
  0x1a   :  { %564 = vmatmul.mubr.f32.vlgmr.msra.gmra.mrb[0].mxu0 %v89_v11 }
  0x1e   :  { %543 = vmatmul.mubr.f32.vlgmr.msra.gmra.mrb[0].mxu1 %v90_v12 }
  0xed   :  { %v477_v25 = vpop.f32.mrb[0].mxu0 }
  0xee   :  { %v565_v26 = vpop.f32.mrb[1].mxu0 }
  0xf1   :  { %v252_v27 = vpop.f32.mrb[0].mxu1 }
  0xf2   :  { %v584_v29 = vadd.f32 %v477_v25, %v252_v27  ;;  %v544_v30 = vpop.f32.mrb[1].mxu1 }
  0xf4   :  { %v488_v31 = vmul.f32 %v584_v29, %v505_v28 }
  0xf6   :  { %490 = vst.msk [vmem:[#allocation2] sm:$0xff] %vm489_vm2, %v488_v31 }
  0xf7   :  { %608 = shalt.err (!%p605_p4)
}
  0xf8   :  { %s609_s23 = scalar_lea.hbm %s678_s3, 128 }
  0xf9   :  { %p610_p5 = scmp.ne.s32.totalorder %s678_s3, %s609_s23  ;;  %p613_p6 = scmp.lt.u32.totalorder %s609_s23, %s678_s3 }
  0xfb   :  { %p615_p7 = pnand %p613_p6, %p610_p5 }
  0xfd   :  { %618 = shalt.err (!%p615_p7)
}
  0xfe   :  { %500 = dma.vmem_to_hbm [thread:$0]  %s498_s19, 128, %s678_s3, [#allocation3]  }
  0xff   :  { %619 = dma.done.wait [#allocation3], 128  }
 0x100   :  { %620 = vsyncadd [#allocation3], 4294967168 }
 0x101   :  { %504 = vsyncpa [#allocation3], 1 }

// kernel: tpu_custom_call.1
= control target key start
LH: loop header
LB: loop body
LE: loop exit
PB: predicated region body
PF: predicated region fallthrough
CT: control target
= control target key end

     0   :  { %v621_v3 = vmov 0.0|0.0   ;;  %vm622_vm0 = vmmov 0   ;;  %v623_v6 = vmov 0.0   ;;  %vm18_vm1 = vcmask 130048   ;;  %s675_s0 = inlined_call_operand.vmem [shape: f32[8,16], index: 0, kind: input, shape index: {}]   ;;  %s676_s1 = inlined_call_operand.vmem [shape: f32[16,6], index: 1, kind: input, shape index: {}]   ;;  %s677_s2 = inlined_call_operand.vmem [shape: f32[1,6], index: 2, kind: input, shape index: {}]   ;;  %s678_s3 = inlined_call_operand.hbm [shape: f32[8,6], index: 3, kind: output, shape index: {}]  }
   0x1   :  { %v16_v0 = vld [vmem:[%s676_s1] sm:$0xff]  ;;  %v17_v1 = vld [vmem:[%s676_s1 + $0x8] sm:$0xff]  ;;  %575 = vmatprep.subr.bf16.mxu0 %v621_v3  ;;  %549 = vmatprep.mubr.msk.f32.mxu0 %vm622_vm0, %v623_v6 }
   0x2   :  { %v15_v2 = vld [vmem:[%s675_s0] sm:$0xff]  ;;  %v23_v4 = vand.u32 4294901760, %v16_v0  ;;  %v26_v5 = vand.u32 4294901760, %v17_v1 }
   0x3   :  { %8 = vsyncpa [#allocation3], 0  ;;  %566 = vmatprep.subr.bf16.mxu1 %v621_v3  ;;  %v20_v7 = vsel %vm18_vm1, %v15_v2, 0  ;;  %528 = vmatprep.mubr.msk.f32.mxu1 %vm622_vm0, %v623_v6  ;;  %v505_v28 = vld [vmem:[%s677_s2] ss:$0 sm:$0xff]  ;;  %s624_s18 = smov [#allocation2]  }
   0x4   :  { %v567_v8 = vpack.c.bf16 %v26_v5, %v23_v4  ;;  %v101_v9 = vsub.f32 %v16_v0, %v23_v4  ;;  %v108_v10 = vsub.f32 %v17_v1, %v26_v5  ;;  %v89_v11 = vand.u32 4294901760, %v20_v7  ;;  %s497_s19 = sshll.u32 %s624_s18, 4  ;;  %s498_s19 = int_to_ptr.vmem [resolvable:$true] %s497_s19 }
   0x5   :  { %vm489_vm2 = vcmask 48128   ;;  %s597_s20 = scalar_lea.vmem %s498_s19, 128  ;;  %p602_p1 = scmp.lt.s32.totalorder %s498_s19, %s498_s19 }
   0x6   :  { %577 = vmatpush3.bf16.msra.mxu0 %v567_v8  ;;  %v90_v12 = vsub.f32 %v20_v7, %v89_v11  ;;  %568 = vmatpush3.bf16.msra.mxu1 %v567_v8  ;;  %v102_v13 = vand.u32 4294901760, %v101_v9  ;;  %v109_v14 = vand.u32 4294901760, %v108_v10  ;;  %v573_v24 = vpack.c.bf16 %v108_v10, %v101_v9  ;;  %p598_p0 = scmp.ne.s32.totalorder %s498_s19, %s597_s20  ;;  %p603_p2 = scmp.lt.s32.totalorder %s597_s20, %s597_s20 }
   0x7   :  { %569 = vmatprep.subr.bf16.mxu1 %v621_v3  ;;  %578 = vmatprep.subr.bf16.mxu0 %v621_v3 }
   0x8   :  { %v91_v15 = vand.u32 4294901760, %v90_v12  ;;  %v103_v16 = vsub.f32 %v101_v9, %v102_v13  ;;  %v110_v17 = vsub.f32 %v108_v10, %v109_v14  ;;  %v579_v18 = vpack.c.bf16 %v109_v14, %v102_v13  ;;  %p604_p3 = por %p603_p2, %p602_p1 }
   0xa   :  { %550 = vmatmul.mubr.f32.vlgmr.msra.gmra.mrb[0].mxu0 %v91_v15  ;;  %v92_v19 = vsub.f32 %v90_v12, %v91_v15  ;;  %v104_v20 = vand.u32 4294901760, %v103_v16  ;;  %v111_v21 = vand.u32 4294901760, %v110_v17  ;;  %p605_p4 = pnand %p604_p3, %p598_p0 }
   0xb   :  { %580 = vmatpush3.bf16.msra.mxu0 %v579_v18  ;;  %556 = vmatprep.mubr.msk.f32.mxu0 %vm622_vm0, %v623_v6 }
   0xc   :  { %v93_v22 = vand.u32 4294901760, %v92_v19  ;;  %v570_v23 = vpack.c.bf16 %v111_v21, %v104_v20  ;;  %581 = vmatprep.subr.bf16.mxu0 %v621_v3 }
   0xe   :  { %529 = vmatmul.mubr.f32.vlgmr.msra.gmra.mrb[0].mxu1 %v93_v22 }
   0xf   :  { %571 = vmatpush3.bf16.msra.mxu1 %v570_v23  ;;  %535 = vmatprep.mubr.msk.f32.mxu1 %vm622_vm0, %v623_v6 }
  0x10   :  { %572 = vmatprep.subr.bf16.mxu1 %v621_v3 }
  0x12   :  { %557 = vmatmul.mubr.f32.vlgmr.msra.gmra.mrb[0].mxu0 %v89_v11 }
  0x13   :  { %583 = vmatpush3.bf16.msra.mxu0 %v567_v8  ;;  %563 = vmatprep.mubr.msk.f32.mxu0 %vm622_vm0, %v623_v6 }
  0x16   :  { %536 = vmatmul.mubr.f32.vlgmr.msra.gmra.mrb[0].mxu1 %v89_v11 }
  0x17   :  { %574 = vmatpush3.bf16.msra.mxu1 %v573_v24  ;;  %542 = vmatprep.mubr.msk.f32.mxu1 %vm622_vm0, %v623_v6 }
  0x1a   :  { %564 = vmatmul.mubr.f32.vlgmr.msra.gmra.mrb[0].mxu0 %v89_v11 }
  0x1e   :  { %543 = vmatmul.mubr.f32.vlgmr.msra.gmra.mrb[0].mxu1 %v90_v12 }
  0xed   :  { %v477_v25 = vpop.f32.mrb[0].mxu0 }
  0xee   :  { %v565_v26 = vpop.f32.mrb[1].mxu0 }
  0xf1   :  { %v252_v27 = vpop.f32.mrb[0].mxu1 }
  0xf2   :  { %v584_v29 = vadd.f32 %v477_v25, %v252_v27  ;;  %v544_v30 = vpop.f32.mrb[1].mxu1 }
  0xf4   :  { %v488_v31 = vmul.f32 %v584_v29, %v505_v28 }
  0xf6   :  { %490 = vst.msk [vmem:[#allocation2] sm:$0xff] %vm489_vm2, %v488_v31 }
  0xf7   :  { %608 = shalt.err (!%p605_p4)
}
  0xf8   :  { %s609_s23 = scalar_lea.hbm %s678_s3, 128 }
  0xf9   :  { %p610_p5 = scmp.ne.s32.totalorder %s678_s3, %s609_s23  ;;  %p613_p6 = scmp.lt.u32.totalorder %s609_s23, %s678_s3 }
  0xfb   :  { %p615_p7 = pnand %p613_p6, %p610_p5 }
  0xfd   :  { %618 = shalt.err (!%p615_p7)
}
  0xfe   :  { %500 = dma.vmem_to_hbm [thread:$0]  %s498_s19, 128, %s678_s3, [#allocation3]  }
  0xff   :  { %619 = dma.done.wait [#allocation3], 128  }
 0x100   :  { %620 = vsyncadd [#allocation3], 4294967168 }
 0x101   :  { %504 = vsyncpa [#allocation3], 1 }

</bundles_post_ra>
